<compile_context>
chip_gen: v6e
topology: v6e:2x2x1
jax: 0.10.0
libtpu: 0.0.40
codegen_flags: <defaults>
</compile_context>

<pallas_src>
from functools import partial

import jax
import jax.numpy as jnp
from jax.experimental import pallas as pl
from jax.experimental.pallas import tpu as pltpu

SIZE = 3            # input feature size (module default)
INTERMEDIATE = 1    # intermediate=0 in __init__ -> intermediate_nodes = 1
NEG_SLOPE = 0.01    # nn.LeakyReLU default negative_slope

_H_IN = 15 + 5                 # fused first-layer width
_H_COMBO = 3 + INTERMEDIATE    # combined [head-hidden | x2] width


def _leaky_relu(x):
    return jnp.where(x > 0, x, NEG_SLOPE * x)


def _round_up(n, m):
    return ((n + m - 1) // m) * m


# ----------------------------------------------------------------------------
# Kernel (feature-major: batch on the 128-lane axis)
# ----------------------------------------------------------------------------
def annx_kernel(xT_ref,
                w_inT_ref, b_inT_ref,      # fused soc_vec[0] | n[0]       (20, SIZE), (20, 1)
                w_cT_ref, b_cT_ref,        # blockdiag(w2,w4)∘w5 | w4-cols (3+I, 20), (3+I, 1)
                w6T_ref, b6T_ref,          # soc[2]                        (1, 3), (1, 1)
                y_ref, x2_ref):
    xT = xT_ref[...]                                                 # (SIZE, TB)

    # fused first layers of both branches + single LeakyReLU pass
    h = jnp.dot(w_inT_ref[...], xT,
                preferred_element_type=jnp.float32) + b_inT_ref[...]
    h = _leaky_relu(h)                                               # (20, TB)

    # block-diag second layers composed with soc[0]; one matmul yields
    # [pre-activation head hidden (3 rows) | x2 (I rows)]
    z = jnp.dot(w_cT_ref[...], h,
                preferred_element_type=jnp.float32) + b_cT_ref[...]  # (3+I, TB)

    h3 = _leaky_relu(z[:3, :])                                       # (3, TB)
    x2_ref[...] = z[3:, :]                                           # (I, TB) lane-dense store

    # head output: Linear(3, 1)
    y_ref[...] = jnp.dot(w6T_ref[...], h3,
                         preferred_element_type=jnp.float32) + b6T_ref[...]  # (1, TB)


# ----------------------------------------------------------------------------
# Parameter init / packing
# ----------------------------------------------------------------------------
def init_params(key, size=SIZE, inter=INTERMEDIATE):
    """Per-layer synthetic parameters, (in, out) weight layout, (1, out) biases."""
    ks = jax.random.split(key, 6)

    def lin(k, fan_in, fan_out):
        kw, kb = jax.random.split(k)
        bound = 1.0 / jnp.sqrt(jnp.float32(fan_in))
        w = jax.random.uniform(kw, (fan_in, fan_out), jnp.float32, -bound, bound)
        b = jax.random.uniform(kb, (1, fan_out), jnp.float32, -bound, bound)
        return w, b

    w1, b1 = lin(ks[0], size, 15)        # soc_vec[0]
    w2, b2 = lin(ks[1], 15, 5)           # soc_vec[2]
    w3, b3 = lin(ks[2], size, 5)         # n[0]
    w4, b4 = lin(ks[3], 5, inter)        # n[2]
    w5, b5 = lin(ks[4], 5 + inter, 3)    # soc[0]
    w6, b6 = lin(ks[5], 3, 1)            # soc[2]
    return (w1, b1, w2, b2, w3, b3, w4, b4, w5, b5, w6, b6)


def pack_params(raw):
    """Fuse branch layers, compose the block-diag layer with soc[0], transpose
    everything to feature-major (out, in) / (out, 1) layout."""
    w1, b1, w2, b2, w3, b3, w4, b4, w5, b5, w6, b6 = raw
    inter = w4.shape[1]

    # fused first layer of both branches
    w_in = jnp.concatenate([w1, w3], axis=1)                     # (SIZE, 20)
    b_in = jnp.concatenate([b1, b3], axis=1)                     # (1, 20)

    # block-diagonal second layer: h @ W_mid = [x1 | x2]
    w_mid = jnp.zeros((15 + 5, 5 + inter), jnp.float32)
    w_mid = w_mid.at[:15, :5].set(w2)
    w_mid = w_mid.at[15:, 5:].set(w4)
    b_mid = jnp.concatenate([b2, b4], axis=1)                    # (1, 5+I)

    # compose with soc[0] (no activation in between):  xm @ w5 + b5
    w_mh = w_mid @ w5                                            # (20, 3)
    b_mh = b_mid @ w5 + b5                                       # (1, 3)

    # append x2 columns so one matmul yields [head_hidden_pre | x2]
    w_x2 = jnp.zeros((15 + 5, inter), jnp.float32).at[15:, :].set(w4)  # (20, I)
    w_combo = jnp.concatenate([w_mh, w_x2], axis=1)              # (20, 3+I)
    b_combo = jnp.concatenate([b_mh, b4], axis=1)                # (1, 3+I)

    # transpose to feature-major for the kernel
    return (w_in.T, b_in.T, w_combo.T, b_combo.T, w6.T, b6.T)


# ----------------------------------------------------------------------------
# Wrapper
# ----------------------------------------------------------------------------
def _choose_tile(batch, tile_b_max):
    """Lane-axis batch tile: multiple of 256 (MXU-friendly on v6e/v7x), capped
    so large batches keep >= 4 grid steps (>= 2 per TensorCore on v7x)."""
    tb = _round_up(max(1, -(-batch // 4)), 256)
    return max(256, min(tile_b_max, tb))


@partial(jax.jit, static_argnames=("tile_b",))
def annx_forward(x, packed, tile_b=32768):
    B, size = x.shape
    w_inT, b_inT, w_cT, b_cT, w6T, b6T = packed
    inter = w_cT.shape[0] - 3

    # one transpose: batch moves to the lane axis; all kernel math/stores are
    # lane-dense afterwards.  Outputs come back as (1, B)/(I, B) and the final
    # .T is a free reshape for the (1, B) row vector.
    xT = x.T                                                     # (SIZE, B)

    TB = _choose_tile(B, tile_b)
    grid = (pl.cdiv(B, TB),)                                     # ragged last block is masked

    # whole-array parameter blocks with constant index_map -> resident in VMEM
    param_specs = [pl.BlockSpec(p.shape, lambda i: (0, 0)) for p in packed]

    flops = 2 * B * (size * _H_IN + _H_IN * (3 + inter) + 3 * 1)
    param_bytes = sum(int(p.size) for p in packed) * 4
    bytes_accessed = B * (size + 1 + inter) * 4 + param_bytes

    y_t, x2_t = pl.pallas_call(
        annx_kernel,
        out_shape=(jax.ShapeDtypeStruct((1, B), jnp.float32),
                   jax.ShapeDtypeStruct((inter, B), jnp.float32)),
        grid=grid,
        in_specs=[pl.BlockSpec((size, TB), lambda i: (0, i))] + param_specs,
        out_specs=(pl.BlockSpec((1, TB), lambda i: (0, i)),
                   pl.BlockSpec((inter, TB), lambda i: (0, i))),
        compiler_params=pltpu.CompilerParams(
            dimension_semantics=("parallel",),          # megacore / 2-TC sharding
            vmem_limit_bytes=32 * 1024 * 1024),
        cost_estimate=pl.CostEstimate(
            flops=int(flops), transcendentals=0,
            bytes_accessed=int(bytes_accessed)),
    )(xT, *packed)

    return y_t.T, x2_t.T                                          # (B, 1), (B, I)


# ----------------------------------------------------------------------------
# Pure-JAX reference (mirrors the PyTorch module exactly, unfused weights)
# ----------------------------------------------------------------------------
def annx_reference(x, raw):
    w1, b1, w2, b2, w3, b3, w4, b4, w5, b5, w6, b6 = raw
    lrelu = lambda v: jnp.where(v > 0, v, NEG_SLOPE * v)
    x1 = lrelu(x @ w1 + b1) @ w2 + b2
    x2 = lrelu(x @ w3 + b3) @ w4 + b4
    h = jnp.concatenate([x1, x2], axis=1)      # torch.hstack
    y = lrelu(h @ w5 + b5) @ w6 + b6
    return y, x2


if __name__ == "__main__":
    key = jax.random.PRNGKey(0)
    kx, kx2, kp = jax.random.split(key, 3)

    raw = init_params(kp)
    packed = pack_params(raw)

    # small case (single, partially-masked tile)
    B = 8
    x = jax.random.normal(kx, (B, SIZE), jnp.float32)
    y, x2 = annx_forward(x, packed)
    jax.block_until_ready((y, x2))
    y_ref, x2_ref = annx_reference(x, raw)
    assert y.shape == (B, 1) and x2.shape == (B, INTERMEDIATE)
    assert jnp.allclose(y, y_ref, atol=1e-4, rtol=1e-4)
    assert jnp.allclose(x2, x2_ref, atol=1e-4, rtol=1e-4)

    # larger ragged case: exercises multi-step grid + masked last block
    B2 = 1000
    xb = jax.random.normal(kx2, (B2, SIZE), jnp.float32)
    yb, x2b = annx_forward(xb, packed, tile_b=256)
    jax.block_until_ready((yb, x2b))
    yb_ref, x2b_ref = annx_reference(xb, raw)
    assert yb.shape == (B2, 1) and x2b.shape == (B2, INTERMEDIATE)
    assert jnp.allclose(yb, yb_ref, atol=1e-4, rtol=1e-4)
    assert jnp.allclose(x2b, x2b_ref, atol=1e-4, rtol=1e-4)

    print("KERNEL_OK")
</pallas_src>

<mosaic_0001>
module attributes {stable_mosaic.version = 11 : i64} {
  func.func @annx_kernel(%arg0: i32, %arg1: memref<3x256xf32, #tpu.memory_space<vmem>>, %arg2: memref<20x3xf32, #tpu.memory_space<vmem>>, %arg3: memref<20x1xf32, #tpu.memory_space<vmem>>, %arg4: memref<4x20xf32, #tpu.memory_space<vmem>>, %arg5: memref<4x1xf32, #tpu.memory_space<vmem>>, %arg6: memref<1x3xf32, #tpu.memory_space<vmem>>, %arg7: memref<1x1xf32, #tpu.memory_space<vmem>>, %arg8: memref<1x256xf32, #tpu.memory_space<vmem>>, %arg9: memref<1x256xf32, #tpu.memory_space<vmem>>) attributes {dimension_semantics = [#tpu.dimension_semantics<parallel>], iteration_bounds = array<i64: 1>, scalar_prefetch = 0 : i64, scratch_operands = 0 : i64, tpu.core_type = #tpu.core_type<tc>, window_params = [{transform_indices = @transform_0, window_bounds = array<i64: 3, 256>}, {pipeline_mode = #tpu.pipeline_mode<synchronous>, transform_indices = @transform_1, window_bounds = array<i64: 20, 3>}, {pipeline_mode = #tpu.pipeline_mode<synchronous>, transform_indices = @transform_2, window_bounds = array<i64: 20, 1>}, {pipeline_mode = #tpu.pipeline_mode<synchronous>, transform_indices = @transform_3, window_bounds = array<i64: 4, 20>}, {pipeline_mode = #tpu.pipeline_mode<synchronous>, transform_indices = @transform_4, window_bounds = array<i64: 4, 1>}, {pipeline_mode = #tpu.pipeline_mode<synchronous>, transform_indices = @transform_5, window_bounds = array<i64: 1, 3>}, {pipeline_mode = #tpu.pipeline_mode<synchronous>, transform_indices = @transform_6, window_bounds = array<i64: 1, 1>}, {transform_indices = @transform_7, window_bounds = array<i64: 1, 256>}, {transform_indices = @transform_8, window_bounds = array<i64: 1, 256>}]} {
    %c0 = arith.constant 0 : index
    %c0_0 = arith.constant 0 : index
    %0 = vector.load %arg1[%c0, %c0_0] : memref<3x256xf32, #tpu.memory_space<vmem>>, vector<3x256xf32>
    %c0_1 = arith.constant 0 : index
    %c0_2 = arith.constant 0 : index
    %1 = vector.load %arg2[%c0_1, %c0_2] : memref<20x3xf32, #tpu.memory_space<vmem>>, vector<20x3xf32>
    %cst = arith.constant dense<0.000000e+00> : vector<20x256xf32>
    %2 = tpu.matmul %1, %0, %cst {dimension_numbers = #tpu.dot_dimension_numbers<[1], [0], [0], [1], [0, 0, 1, 1], [], []>} : vector<20x3xf32>, vector<3x256xf32>, vector<20x256xf32> -> vector<20x256xf32>
    %c0_3 = arith.constant 0 : index
    %c0_4 = arith.constant 0 : index
    %3 = vector.load %arg3[%c0_3, %c0_4] : memref<20x1xf32, #tpu.memory_space<vmem>>, vector<20x1xf32>
    %4 = vector.broadcast %3 : vector<20x1xf32> to vector<20x256xf32>
    %5 = arith.addf %2, %4 : vector<20x256xf32>
    %cst_5 = arith.constant 0.000000e+00 : f32
    %6 = vector.broadcast %cst_5 : f32 to vector<20x256xf32>
    %7 = arith.cmpf ogt, %5, %6 : vector<20x256xf32>
    %cst_6 = arith.constant 0.00999999977 : f32
    %8 = vector.broadcast %cst_6 : f32 to vector<20x256xf32>
    %9 = arith.mulf %8, %5 : vector<20x256xf32>
    %10 = arith.select %7, %5, %9 : vector<20x256xi1>, vector<20x256xf32>
    %c0_7 = arith.constant 0 : index
    %c0_8 = arith.constant 0 : index
    %11 = vector.load %arg4[%c0_7, %c0_8] : memref<4x20xf32, #tpu.memory_space<vmem>>, vector<4x20xf32>
    %cst_9 = arith.constant dense<0.000000e+00> : vector<4x256xf32>
    %12 = tpu.matmul %11, %10, %cst_9 {dimension_numbers = #tpu.dot_dimension_numbers<[1], [0], [0], [1], [0, 0, 1, 1], [], []>} : vector<4x20xf32>, vector<20x256xf32>, vector<4x256xf32> -> vector<4x256xf32>
    %c0_10 = arith.constant 0 : index
    %c0_11 = arith.constant 0 : index
    %13 = vector.load %arg5[%c0_10, %c0_11] : memref<4x1xf32, #tpu.memory_space<vmem>>, vector<4x1xf32>
    %14 = vector.broadcast %13 : vector<4x1xf32> to vector<4x256xf32>
    %15 = arith.addf %12, %14 : vector<4x256xf32>
    %16 = vector.extract_strided_slice %15 {offsets = [0, 0], sizes = [3, 256], strides = [1, 1]} : vector<4x256xf32> to vector<3x256xf32>
    %cst_12 = arith.constant 0.000000e+00 : f32
    %17 = vector.broadcast %cst_12 : f32 to vector<3x256xf32>
    %18 = arith.cmpf ogt, %16, %17 : vector<3x256xf32>
    %cst_13 = arith.constant 0.00999999977 : f32
    %19 = vector.broadcast %cst_13 : f32 to vector<3x256xf32>
    %20 = arith.mulf %19, %16 : vector<3x256xf32>
    %21 = arith.select %18, %16, %20 : vector<3x256xi1>, vector<3x256xf32>
    %22 = vector.extract_strided_slice %15 {offsets = [3, 0], sizes = [1, 256], strides = [1, 1]} : vector<4x256xf32> to vector<1x256xf32>
    %c0_14 = arith.constant 0 : index
    %c0_15 = arith.constant 0 : index
    %23 = vector.load %arg9[%c0_14, %c0_15] : memref<1x256xf32, #tpu.memory_space<vmem>>, vector<1x256xf32>
    tpu.vector_store %arg9[%c0_14, %c0_15], %22 {strides = array<i32>} : memref<1x256xf32, #tpu.memory_space<vmem>>, vector<1x256xf32>,
    %c0_16 = arith.constant 0 : index
    %c0_17 = arith.constant 0 : index
    %24 = vector.load %arg6[%c0_16, %c0_17] : memref<1x3xf32, #tpu.memory_space<vmem>>, vector<1x3xf32>
    %cst_18 = arith.constant dense<0.000000e+00> : vector<1x256xf32>
    %25 = tpu.matmul %24, %21, %cst_18 {dimension_numbers = #tpu.dot_dimension_numbers<[1], [0], [0], [1], [0, 0, 1, 1], [], []>} : vector<1x3xf32>, vector<3x256xf32>, vector<1x256xf32> -> vector<1x256xf32>
    %c0_19 = arith.constant 0 : index
    %c0_20 = arith.constant 0 : index
    %26 = vector.load %arg7[%c0_19, %c0_20] : memref<1x1xf32, #tpu.memory_space<vmem>>, vector<1x1xf32>
    %27 = vector.broadcast %26 : vector<1x1xf32> to vector<1x256xf32>
    %28 = arith.addf %25, %27 : vector<1x256xf32>
    %c0_21 = arith.constant 0 : index
    %c0_22 = arith.constant 0 : index
    %29 = vector.load %arg8[%c0_21, %c0_22] : memref<1x256xf32, #tpu.memory_space<vmem>>, vector<1x256xf32>
    tpu.vector_store %arg8[%c0_21, %c0_22], %28 {strides = array<i32>} : memref<1x256xf32, #tpu.memory_space<vmem>>, vector<1x256xf32>,
    return
  }
  func.func @transform_0(%arg0: i32) -> (i32, i32) {
    %c0_i32 = arith.constant 0 : i32
    %c0_i32_0 = arith.constant 0 : i32
    return %c0_i32, %arg0 : i32, i32
  }
  func.func @transform_1(%arg0: i32) -> (i32, i32) {
    %c0_i32 = arith.constant 0 : i32
    %c0_i32_0 = arith.constant 0 : i32
    %c0_i32_1 = arith.constant 0 : i32
    return %c0_i32, %c0_i32_0 : i32, i32
  }
  func.func @transform_2(%arg0: i32) -> (i32, i32) {
    %c0_i32 = arith.constant 0 : i32
    %c0_i32_0 = arith.constant 0 : i32
    %c0_i32_1 = arith.constant 0 : i32
    return %c0_i32, %c0_i32_0 : i32, i32
  }
  func.func @transform_3(%arg0: i32) -> (i32, i32) {
    %c0_i32 = arith.constant 0 : i32
    %c0_i32_0 = arith.constant 0 : i32
    %c0_i32_1 = arith.constant 0 : i32
    return %c0_i32, %c0_i32_0 : i32, i32
  }
  func.func @transform_4(%arg0: i32) -> (i32, i32) {
    %c0_i32 = arith.constant 0 : i32
    %c0_i32_0 = arith.constant 0 : i32
    %c0_i32_1 = arith.constant 0 : i32
    return %c0_i32, %c0_i32_0 : i32, i32
  }
  func.func @transform_5(%arg0: i32) -> (i32, i32) {
    %c0_i32 = arith.constant 0 : i32
    %c0_i32_0 = arith.constant 0 : i32
    %c0_i32_1 = arith.constant 0 : i32
    return %c0_i32, %c0_i32_0 : i32, i32
  }
  func.func @transform_6(%arg0: i32) -> (i32, i32) {
    %c0_i32 = arith.constant 0 : i32
    %c0_i32_0 = arith.constant 0 : i32
    %c0_i32_1 = arith.constant 0 : i32
    return %c0_i32, %c0_i32_0 : i32, i32
  }
  func.func @transform_7(%arg0: i32) -> (i32, i32) {
    %c0_i32 = arith.constant 0 : i32
    %c0_i32_0 = arith.constant 0 : i32
    return %c0_i32, %arg0 : i32, i32
  }
  func.func @transform_8(%arg0: i32) -> (i32, i32) {
    %c0_i32 = arith.constant 0 : i32
    %c0_i32_0 = arith.constant 0 : i32
    return %c0_i32, %arg0 : i32, i32
  }
}

</mosaic_0001>

<bundles_post_ra>
// kernel: annx_forward.1
= control target key start
LH: loop header
LB: loop body
LE: loop exit
PB: predicated region body
PF: predicated region fallthrough
CT: control target
= control target key end

     0   :  { %s595_s0 = inlined_call_operand.vmem [shape: f32[3,8], index: 0, kind: input, shape index: {}]   ;;  %s596_s1 = inlined_call_operand.vmem [shape: f32[20,3], index: 1, kind: input, shape index: {}]   ;;  %s597_s2 = inlined_call_operand.vmem [shape: f32[20,1], index: 2, kind: input, shape index: {}]   ;;  %s598_s3 = inlined_call_operand.vmem [shape: f32[4,20], index: 3, kind: input, shape index: {}]   ;;  %s599_s4 = inlined_call_operand.vmem [shape: f32[4,1], index: 4, kind: input, shape index: {}]   ;;  %s600_s5 = inlined_call_operand.vmem [shape: f32[1,3], index: 5, kind: input, shape index: {}]   ;;  %s601_s6 = inlined_call_operand.<no memory space> [shape: f32[1,1], index: 6, kind: input, shape index: {}]   ;;  %s602_s7 = inlined_call_operand.hbm [shape: f32[1,8], index: 7, kind: output, shape index: {0}]   ;;  %s603_s8 = inlined_call_operand.hbm [shape: f32[1,8], index: 8, kind: output, shape index: {1}]  }
   0x1   :  { %v14_v0 = vstv %s601_s6 }
   0x2   :  { %15 = vst [vmem:[#allocation2] sm:$0x1] %v14_v0 }
   0x3   :  { %16 = vsyncpa [#allocation4], 0 }
   0x4   :  { %17 = vsyncpa [#allocation6], 0  ;;  %v32_v1 = vld [vmem:[%s595_s0] sm:$0x77]  ;;  %vm66_vm0 = vcmask 1042432   ;;  %v493_v3 = vmov 0.0   ;;  %v273_v43 = vlaneseq }
   0x5   :  { %v55_v2 = vcombine.high %v32_v1, %v32_v1  ;;  %135 = vmatprep.mubr.f32.mxu0 %v493_v3  ;;  %254 = vmatprep.mubr.f32.mxu1 %v493_v3  ;;  %v33_v4 = vld [vmem:[%s596_s1] sm:$0xff]  ;;  %vm56_vm1 = vcmask 23552   ;;  %v494_v5 = vmov 0   ;;  %v38_v6 = vld [vmem:[%s597_s2 + $0x10] sm:$0xf]  ;;  %v37_v8 = vld [vmem:[%s597_s2 + $0x8] sm:$0xff] }
   0x6   :  { %447 = vset.pattern.permute.xlu1 %v494_v5  ;;  %446 = vset.pattern.permute.xlu0 %v494_v5  ;;  %v36_v7 = vld [vmem:[%s597_s2] sm:$0xff]  ;;  %v34_v10 = vld [vmem:[%s596_s1 + $0x8] sm:$0xff]  ;;  %v35_v12 = vld [vmem:[%s596_s1 + $0x10] sm:$0xf]  ;;  %vm183_vm2 = vcmask 1043456   ;;  %vm179_vm9 = vcmask 162816  }
   0x7   :  { %430 = vmatprep.subr.msk.mxu0 %vm66_vm0, %v55_v2  ;;  %51 = vperm.xlu0 %446, %v38_v6   ;;  %v173_v9 = vld [vmem:[%s599_s4] sm:$0xf]  ;;  %v495_v41 = vmov 1966171168   ;;  %v274_v47 = vshrl.u32 %v273_v43, 7  ;;  %vm289_vm12 = vcmp.lt.s32.totalorder %v273_v43, 256 }
   0x8   :  { %431 = vmatpush1.msk.msra.mxu0 %vm66_vm0, %v32_v1  ;;  %41 = vperm.xlu1 %447, %v36_v7   ;;  %v172_v39 = vld [vmem:[%s598_s3] sm:$0xf]  ;;  %v271_v42 = vunpack.c.l.s4 %v495_v41 }
   0x9   :  { %432 = vmatmul.mubr.msk.f32.vlgmr.msra.gmra.mxu0 %vm56_vm1, %v33_v4  ;;  %v293_v11 = vld [vmem:[#allocation2] sm:$0x1]  ;;  %v301_v62 = vsub.s32 0, %v274_v47 }
   0xa   :  { %141 = vmatprep.mubr.f32.mxu0 %v493_v3  ;;  %v272_v44 = vunpack.c.0.s8 %v271_v42  ;;  %v292_v57 = vld [vmem:[%s600_s5] sm:$0x1] }
   0xb   :  { %46 = vperm.xlu0 %446, %v37_v8  }
   0xc   :  { %176 = vperm.xlu1 %447, %v173_v9   ;;  %v275_v50 = vsub.s32 %v272_v44, %v274_v47 }
   0xd   :  { %433 = vmatmul.mubr.msk.f32.gmra.mxu0 %vm56_vm1, %v34_v10 }
   0xe   :  { %147 = vmatprep.mubr.f32.mxu0 %v493_v3 }
   0xf   :  { %296 = vperm.xlu0 %446, %v293_v11  }
  0x11   :  { %434 = vmatmul.mubr.msk.f32.gmra.mxu0 %vm56_vm1, %v35_v12 }
  0x82   :  { %v52_v14 = vpop.permute.xlu0 %51 }
  0x83   :  { %v42_v20 = vpop.permute.xlu1 %41 }
  0x86   :  { %v47_v18 = vpop.permute.xlu0 %46 }
  0x87   :  { %v177_v45 = vpop.permute.xlu1 %176 }
  0x8a   :  { %v297_v63 = vpop.permute.xlu0 %296 }
  0x8b   :  { %v302_v1 = vrot.slane %v297_v63, %v301_v62 }
  0xc9   :  { %v137_v13 = vpop.f32.mrf.mxu0 }
  0xca   :  { %v138_v27 = vadd.f32 %v137_v13, %v42_v20 }
  0xcb   :  { %v139_v15 = vpop.f32.mrf.mxu0 }
  0xcc   :  { %v140_v25 = vadd.f32 %v139_v15, %v42_v20  ;;  %v160_v34 = vmul.f32 0.01, %v138_v27  ;;  %vm154_vm8 = vcmp.gt.f32.partialorder %v138_v27, 0.0 }
  0xcd   :  { %v143_v16 = vpop.f32.mrf.mxu0 }
  0xce   :  { %v144_v23 = vadd.f32 %v143_v16, %v47_v18  ;;  %v161_v32 = vmul.f32 0.01, %v140_v25  ;;  %vm155_vm7 = vcmp.gt.f32.partialorder %v140_v25, 0.0  ;;  %v166_v40 = vsel %vm154_vm8, %v138_v27, %v160_v34 }
  0xcf   :  { %v145_v17 = vpop.f32.mrf.mxu0 }
  0xd0   :  { %v146_v21 = vadd.f32 %v145_v17, %v47_v18  ;;  %v162_v31 = vmul.f32 0.01, %v144_v23  ;;  %vm156_vm6 = vcmp.gt.f32.partialorder %v144_v23, 0.0  ;;  %v167_v38 = vsel %vm155_vm7, %v140_v25, %v161_v32 }
  0xd1   :  { %v149_v19 = vpop.f32.mrf.mxu0 }
  0xd2   :  { %v150_v22 = vadd.f32 %v149_v19, %v52_v14  ;;  %v163_v29 = vmul.f32 0.01, %v146_v21  ;;  %vm157_vm5 = vcmp.gt.f32.partialorder %v146_v21, 0.0  ;;  %v168_v37 = vsel %vm156_vm6, %v144_v23, %v162_v31 }
  0xd3   :  { %v151_v24 = vpop.f32.mrf.mxu0 }
  0xd4   :  { %v152_v26 = vadd.f32 %v151_v24, %v52_v14  ;;  %v164_v28 = vmul.f32 0.01, %v150_v22  ;;  %vm158_vm4 = vcmp.gt.f32.partialorder %v150_v22, 0.0  ;;  %v169_v36 = vsel %vm157_vm5, %v146_v21, %v163_v29 }
  0xd6   :  { %vm159_vm3 = vcmp.gt.f32.partialorder %v152_v26, 0.0  ;;  %v165_v30 = vmul.f32 0.01, %v152_v26  ;;  %v170_v35 = vsel %vm158_vm4, %v150_v22, %v164_v28 }
  0xd8   :  { %v171_v33 = vsel %vm159_vm3, %v152_v26, %v165_v30 }
  0xd9   :  { %435 = vmatprep.subr.msk.mxu1 %vm183_vm2, %v171_v33 }
  0xda   :  { %436 = vmatpush1.msk.msra.mxu1 %vm183_vm2, %v170_v35 }
  0xdb   :  { %218 = vmatprep.subr.mxu1 %v169_v36 }
  0xdc   :  { %219 = vmatpush1.msra.mxu1 %v168_v37 }
  0xdd   :  { %220 = vmatprep.subr.mxu1 %v167_v38 }
  0xde   :  { %221 = vmatpush1.msra.mxu1 %v166_v40 }
  0xdf   :  { %437 = vmatmul.mubr.msk.f32.vlgmr.msra.gmra.mxu1 %vm179_vm9, %v172_v39 }
  0xe0   :  { %376 = vmatprep.mubr.f32.mxu1 %v493_v3 }
 0x19f   :  { %v256_v46 = vpop.f32.mrf.mxu1 }
 0x1a0   :  { %v257_v48 = vadd.f32 %v256_v46, %v177_v45 }
 0x1a1   :  { %v258_v49 = vpop.f32.mrf.mxu1 }
 0x1a2   :  { %v259_v51 = vadd.f32 %v258_v49, %v177_v45  ;;  %v263_v52 = vmul.f32 0.01, %v257_v48  ;;  %vm261_vm11 = vcmp.gt.f32.partialorder %v257_v48, 0.0 }
 0x1a4   :  { %v269_v53 = vcombine.low %v257_v48, %v259_v51  ;;  %vm262_vm10 = vcmp.gt.f32.partialorder %v259_v51, 0.0  ;;  %v264_v54 = vmul.f32 0.01, %v259_v51  ;;  %v265_v58 = vsel %vm261_vm11, %v257_v48, %v263_v52 }
 0x1a6   :  { %v276_v55 = vrot.slane %v269_v53, %v275_v50  ;;  %v266_v56 = vsel %vm262_vm10, %v259_v51, %v264_v54 }
 0x1a7   :  { %438 = vmatprep.subr.msk.mxu1 %vm66_vm0, %v266_v56 }
 0x1a8   :  { %v277_v59 = vcombine.high %v276_v55, %v276_v55  ;;  %439 = vmatpush1.msk.msra.mxu1 %vm66_vm0, %v265_v58 }
 0x1a9   :  { %440 = vmatmul.mubr.msk.f32.vlgmr.msra.gmra.mxu1 %vm56_vm1, %v292_v57 }
 0x1aa   :  { %v284_v60 = vrot.slane %v277_v59, %v275_v50 }
 0x1ac   :  { %v285_v61 = vcombine.high %v284_v60, %v284_v60 }
 0x1ae   :  { %291 = vst.msk [vmem:[#allocation5] sm:$0x3] %vm289_vm12, %v285_v61 }
 0x269   :  { %v378_v0 = vpop.f32.mrf.mxu1 }
 0x26a   :  { %v379_v3 = vadd.f32 %v378_v0, %v302_v1 }
 0x26b   :  { %v380_v2 = vpop.f32.mrf.mxu1 }
 0x26c   :  { %v381_v4 = vadd.f32 %v380_v2, %v302_v1 }
 0x26e   :  { %v385_v5 = vcombine.low %v379_v3, %v381_v4 }
 0x270   :  { %v392_v6 = vrot.slane %v385_v5, %v275_v50 }
 0x272   :  { %v399_v7 = vrot.slane %v392_v6, %v275_v50 }
 0x274   :  { %401 = vst.msk [vmem:[#allocation3] sm:$0x3] %vm289_vm12, %v399_v7 }
 0x275   :  { %406 = vsyncadd [#allocation4], 16  ;;  %s496_s5 = smov [#allocation3]  }
 0x276   :  { %s408_s21 = sshll.u32 %s496_s5, 4  ;;  %s409_s21 = int_to_ptr.vmem [resolvable:$true] %s408_s21 }
 0x277   :  { %s449_s22 = scalar_lea.vmem %s409_s21, 16  ;;  %s453_s23 = scalar_lea.vmem %s409_s21, 32 }
 0x278   :  { %p450_p0 = scmp.ne.s32.totalorder %s409_s21, %s449_s22  ;;  %p454_p1 = scmp.lt.s32.totalorder %s409_s21, %s409_s21 }
 0x279   :  { %p455_p2 = scmp.lt.s32.totalorder %s453_s23, %s449_s22 }
 0x27b   :  { %p456_p3 = por %p455_p2, %p454_p1 }
 0x27d   :  { %p457_p4 = pnand %p456_p3, %p450_p0 }
 0x27f   :  { %460 = shalt.err (!%p457_p4)
}
 0x280   :  { %411 = dma.vmem_to_hbm [thread:$0]  %s409_s21, 16, %s602_s7, [#allocation4]  }
 0x281   :  { %416 = vsyncadd [#allocation6], 16  ;;  %s497_s26 = smov [#allocation5]  }
 0x282   :  { %s418_s27 = sshll.u32 %s497_s26, 4  ;;  %s419_s27 = int_to_ptr.vmem [resolvable:$true] %s418_s27 }
 0x283   :  { %s469_s28 = scalar_lea.vmem %s419_s27, 16  ;;  %s473_s29 = scalar_lea.vmem %s419_s27, 32 }
 0x284   :  { %p470_p5 = scmp.ne.s32.totalorder %s419_s27, %s469_s28  ;;  %p474_p6 = scmp.lt.s32.totalorder %s419_s27, %s419_s27 }
 0x285   :  { %p475_p7 = scmp.lt.s32.totalorder %s473_s29, %s469_s28 }
 0x287   :  { %p476_p8 = por %p475_p7, %p474_p6 }
 0x289   :  { %p477_p9 = pnand %p476_p8, %p470_p5 }
 0x28b   :  { %480 = shalt.err (!%p477_p9)
}
 0x28c   :  { %421 = dma.vmem_to_hbm [thread:$0]  %s419_s27, 16, %s603_s8, [#allocation6]  }
 0x28d   :  { %489 = dma.done.wait [#allocation4], 32  }
 0x28e   :  { %490 = vsyncadd [#allocation4], 4294967264 }
 0x28f   :  { %491 = dma.done.wait [#allocation6], 32  }
 0x290   :  { %492 = vsyncadd [#allocation6], 4294967264 }
 0x291   :  { %428 = vsyncpa [#allocation4], 1 }
 0x292   :  { %429 = vsyncpa [#allocation6], 1 }

</bundles_post_ra>
